<compile_context>
chip_gen: v7x
topology: tpu7x:2x2x1
jax: 0.10.0
libtpu: 0.0.40
codegen_flags: <defaults>
</compile_context>

<pallas_src>
import functools

import jax
import jax.numpy as jnp
from jax.experimental import pallas as pl
from jax.experimental.pallas import tpu as pltpu


# ------------------------------- fused kernel -------------------------------

def _basic_block_kernel(x_ref, w1_ref, w2_ref, s1_ref, b1_ref, s2_ref, b2_ref,
                        o_ref, pad_a, pad_b, *, H, WC):
    """One batch element of the whole BasicBlock.

    x_ref:        (1, H, WC)  f32     input (W and C folded onto lanes)
    w1_ref/w2_ref:(3, WC, WC) bf16    banded conv weights (one slab per kh tap)
    s*/b*_ref:    (1, WC)     f32     folded BN scale / bias (tiled over W)
    o_ref:        (1, H, WC)
    pad_a, pad_b: (H+2, WC)   f32     VMEM scratch with 1-row halo top & bottom
    """
    zero_row = jnp.zeros((1, WC), jnp.float32)
    # Only the halo rows ever need zeroing; the interior is always overwritten.
    pad_a[0:1, :] = zero_row
    pad_a[H + 1:H + 2, :] = zero_row
    pad_b[0:1, :] = zero_row
    pad_b[H + 1:H + 2, :] = zero_row

    x = x_ref[0]                       # (H, WC) f32 -- also the residual
    pad_a[1:H + 1, :] = x

    def conv3x3(pad_ref, w_ref):
        # 3 dense MXU matmuls (one per kh tap), f32 accumulation.
        acc = jnp.zeros((H, WC), jnp.float32)
        for kh in range(3):
            lhs = pad_ref[kh:kh + H, :].astype(jnp.bfloat16)   # (H, WC)
            acc = acc + jnp.dot(lhs, w_ref[kh],
                                preferred_element_type=jnp.float32)
        return acc

    # out = relu(bn1(conv1(x)))
    h1 = conv3x3(pad_a, w1_ref)
    h1 = jnp.maximum(h1 * s1_ref[...] + b1_ref[...], 0.0)
    pad_b[1:H + 1, :] = h1

    # out = conv2(out)
    h2 = conv3x3(pad_b, w2_ref)
    pad_a[1:H + 1, :] = h2             # pad_a halo rows are still zero

    # out = conv2(out); out = bn2(out); out += residual; out = relu(out)
    h3 = conv3x3(pad_a, w2_ref)
    h3 = jnp.maximum(h3 * s2_ref[...] + b2_ref[...] + x, 0.0)
    o_ref[0] = h3.astype(o_ref.dtype)


# ------------------------------ wrapper helpers ------------------------------

def _fold_bn(gamma, beta, running_mean, running_var, eps=1e-5):
    scale = gamma / jnp.sqrt(running_var + eps)
    bias = beta - running_mean * scale
    return scale, bias


def _band_weights(w_hwio, W):
    """Fold the kw tap and the W spatial axis of a 3x3 conv weight into a
    block-banded matrix.

    Returns Wb of shape (3, W*Cin, W*Cout), bf16, such that with a zero
    row-halo buffer `pad` of shape (H+2, W*Cin):
        out = sum_kh  pad[kh:kh+H, :] @ Wb[kh]
    equals the stride-1, SAME-padded 3x3 convolution (W padding included in Wb).
    """
    kh, kw, Cin, Cout = w_hwio.shape
    assert (kh, kw) == (3, 3)
    wp = jnp.arange(W)                                   # input column
    wq = jnp.arange(W)                                   # output column
    tap = wp[:, None] - wq[None, :] + 1                  # which kw tap links wp->wq
    valid = ((tap >= 0) & (tap <= 2)).astype(w_hwio.dtype)
    tap = jnp.clip(tap, 0, 2)
    blocks = w_hwio[:, tap] * valid[None, :, :, None, None]   # (3, W, W, Cin, Cout)
    Wb = blocks.transpose(0, 1, 3, 2, 4).reshape(3, W * Cin, W * Cout)
    return Wb.astype(jnp.bfloat16)


def basic_block_forward(x_nhwc, params, eps=1e-5):
    """BasicBlockWOnorm.forward (dcn=None, downsample=None, stride=1), NHWC.

    Equivalent PyTorch NCHW input is x_nhwc.transpose(0, 3, 1, 2).
    """
    N, H, W, C = x_nhwc.shape
    Cout = params["w1"].shape[-1]
    assert params["w1"].shape == (3, 3, C, Cout)
    assert Cout == C, "downsample=None requires inplanes == planes"
    WC = W * C

    bn1_scale, bn1_bias = _fold_bn(params["bn1_gamma"], params["bn1_beta"],
                                   params["bn1_mean"], params["bn1_var"], eps)
    bn2_scale, bn2_bias = _fold_bn(params["bn2_gamma"], params["bn2_beta"],
                                   params["bn2_mean"], params["bn2_var"], eps)

    w1b = _band_weights(params["w1"], W)                 # (3, WC, WC) bf16
    w2b = _band_weights(params["w2"], W)

    x_flat = x_nhwc.reshape(N, H, WC)                    # free (contiguous)
    s1t = jnp.tile(bn1_scale, W).reshape(1, WC).astype(jnp.float32)
    b1t = jnp.tile(bn1_bias, W).reshape(1, WC).astype(jnp.float32)
    s2t = jnp.tile(bn2_scale, W).reshape(1, WC).astype(jnp.float32)
    b2t = jnp.tile(bn2_bias, W).reshape(1, WC).astype(jnp.float32)

    kernel = functools.partial(_basic_block_kernel, H=H, WC=WC)

    flops = int(3 * 3 * 2 * N * H * WC * WC)             # 3 convs x 3 kh matmuls
    bytes_accessed = int(2 * N * H * WC * 4 + 2 * 3 * WC * WC * 2 + 4 * WC * 4)

    out_flat = pl.pallas_call(
        kernel,
        out_shape=jax.ShapeDtypeStruct((N, H, WC), x_nhwc.dtype),
        grid=(N,),
        in_specs=[
            pl.BlockSpec((1, H, WC), lambda b: (b, 0, 0)),     # x
            pl.BlockSpec((3, WC, WC), lambda b: (0, 0, 0)),    # w1 (banded)
            pl.BlockSpec((3, WC, WC), lambda b: (0, 0, 0)),    # w2 (banded)
            pl.BlockSpec((1, WC), lambda b: (0, 0)),           # bn1 scale
            pl.BlockSpec((1, WC), lambda b: (0, 0)),           # bn1 bias
            pl.BlockSpec((1, WC), lambda b: (0, 0)),           # bn2 scale
            pl.BlockSpec((1, WC), lambda b: (0, 0)),           # bn2 bias
        ],
        out_specs=pl.BlockSpec((1, H, WC), lambda b: (b, 0, 0)),
        scratch_shapes=[
            pltpu.VMEM((H + 2, WC), jnp.float32),              # padded act A
            pltpu.VMEM((H + 2, WC), jnp.float32),              # padded act B
        ],
        compiler_params=pltpu.CompilerParams(
            dimension_semantics=("parallel",)),
        cost_estimate=pl.CostEstimate(flops=flops, transcendentals=0,
                                      bytes_accessed=bytes_accessed),
    )(x_flat, w1b, w2b, s1t, b1t, s2t, b2t)

    return out_flat.reshape(N, H, W, C)


# ---------------------------- pure-JAX reference ----------------------------

def _conv3x3_ref(x, w):
    return jax.lax.conv_general_dilated(
        x, w, window_strides=(1, 1), padding="SAME",
        dimension_numbers=("NHWC", "HWIO", "NHWC"))


def basic_block_ref(x, params):
    bn1_scale, bn1_bias = _fold_bn(params["bn1_gamma"], params["bn1_beta"],
                                   params["bn1_mean"], params["bn1_var"])
    bn2_scale, bn2_bias = _fold_bn(params["bn2_gamma"], params["bn2_beta"],
                                   params["bn2_mean"], params["bn2_var"])
    out = _conv3x3_ref(x, params["w1"]) * bn1_scale + bn1_bias
    out = jnp.maximum(out, 0.0)
    out = _conv3x3_ref(out, params["w2"])
    out = _conv3x3_ref(out, params["w2"])       # second application, per reference
    out = out * bn2_scale + bn2_bias
    out = out + x
    return jnp.maximum(out, 0.0)


if __name__ == "__main__":
    key = jax.random.PRNGKey(0)
    N, H, W = 2, 16, 16
    inplanes = planes = 8     # residual add requires inplanes == planes (downsample=None)
    # W * C = 128 -> fully lane-dense layout inside the kernel.

    ks = jax.random.split(key, 8)
    # NHWC input here; equivalent PyTorch NCHW input is x.transpose(0, 3, 1, 2) -> (2, 8, 16, 16)
    x = jax.random.normal(ks[0], (N, H, W, inplanes), jnp.float32)
    params = {
        "w1": jax.random.normal(ks[1], (3, 3, inplanes, planes), jnp.float32) * 0.1,
        "w2": jax.random.normal(ks[2], (3, 3, planes, planes), jnp.float32) * 0.1,
        "bn1_gamma": 1.0 + 0.1 * jax.random.normal(ks[3], (planes,), jnp.float32),
        "bn1_beta": 0.1 * jax.random.normal(ks[4], (planes,), jnp.float32),
        "bn1_mean": 0.05 * jax.random.normal(ks[5], (planes,), jnp.float32),
        "bn1_var": jnp.abs(1.0 + 0.1 * jax.random.normal(ks[6], (planes,), jnp.float32)),
        "bn2_gamma": 1.0 + 0.1 * jax.random.normal(ks[7], (planes,), jnp.float32),
        "bn2_beta": jnp.linspace(-0.1, 0.1, planes, dtype=jnp.float32),
        "bn2_mean": jnp.linspace(-0.05, 0.05, planes, dtype=jnp.float32),
        "bn2_var": jnp.linspace(0.9, 1.1, planes, dtype=jnp.float32),
    }

    out = basic_block_forward(x, params)
    out = jax.block_until_ready(out)

    ref = basic_block_ref(x, params)
    assert out.shape == (N, H, W, planes)
    # bf16 MXU inputs (f32 accumulation) through a 3-conv chain: 2e-2 tolerance.
    assert jnp.allclose(out, ref, atol=2e-2, rtol=2e-2), "mismatch vs. reference"

    print("KERNEL_OK")
</pallas_src>

<mosaic_0001>
module attributes {stable_mosaic.version = 11 : i64} {
  func.func @_basic_block_kernel(%arg0: i32, %arg1: memref<1x16x128xf32, #tpu.memory_space<vmem>>, %arg2: memref<3x128x128xbf16, #tpu.memory_space<vmem>>, %arg3: memref<3x128x128xbf16, #tpu.memory_space<vmem>>, %arg4: memref<1x128xf32, #tpu.memory_space<vmem>>, %arg5: memref<1x128xf32, #tpu.memory_space<vmem>>, %arg6: memref<1x128xf32, #tpu.memory_space<vmem>>, %arg7: memref<1x128xf32, #tpu.memory_space<vmem>>, %arg8: memref<1x16x128xf32, #tpu.memory_space<vmem>>, %arg9: memref<18x128xf32, #tpu.memory_space<vmem>>, %arg10: memref<18x128xf32, #tpu.memory_space<vmem>>) attributes {dimension_semantics = [#tpu.dimension_semantics<parallel>], iteration_bounds = array<i64: 2>, scalar_prefetch = 0 : i64, scratch_operands = 2 : i64, tpu.core_type = #tpu.core_type<tc>, window_params = [{transform_indices = @transform_0, window_bounds = array<i64: 1, 16, 128>}, {pipeline_mode = #tpu.pipeline_mode<synchronous>, transform_indices = @transform_1, window_bounds = array<i64: 3, 128, 128>}, {pipeline_mode = #tpu.pipeline_mode<synchronous>, transform_indices = @transform_2, window_bounds = array<i64: 3, 128, 128>}, {pipeline_mode = #tpu.pipeline_mode<synchronous>, transform_indices = @transform_3, window_bounds = array<i64: 1, 128>}, {pipeline_mode = #tpu.pipeline_mode<synchronous>, transform_indices = @transform_4, window_bounds = array<i64: 1, 128>}, {pipeline_mode = #tpu.pipeline_mode<synchronous>, transform_indices = @transform_5, window_bounds = array<i64: 1, 128>}, {pipeline_mode = #tpu.pipeline_mode<synchronous>, transform_indices = @transform_6, window_bounds = array<i64: 1, 128>}, {transform_indices = @transform_7, window_bounds = array<i64: 1, 16, 128>}]} {
    %cst = arith.constant 0.000000e+00 : f32
    %0 = vector.broadcast %cst : f32 to vector<1x128xf32>
    %c0 = arith.constant 0 : index
    %c0_0 = arith.constant 0 : index
    %1 = vector.load %arg9[%c0, %c0_0] : memref<18x128xf32, #tpu.memory_space<vmem>>, vector<1x128xf32>
    tpu.vector_store %arg9[%c0, %c0_0], %0 {strides = array<i32>} : memref<18x128xf32, #tpu.memory_space<vmem>>, vector<1x128xf32>,
    %c17 = arith.constant 17 : index
    %c0_1 = arith.constant 0 : index
    %2 = vector.load %arg9[%c17, %c0_1] : memref<18x128xf32, #tpu.memory_space<vmem>>, vector<1x128xf32>
    tpu.vector_store %arg9[%c17, %c0_1], %0 {strides = array<i32>} : memref<18x128xf32, #tpu.memory_space<vmem>>, vector<1x128xf32>,
    %c0_2 = arith.constant 0 : index
    %c0_3 = arith.constant 0 : index
    %3 = vector.load %arg10[%c0_2, %c0_3] : memref<18x128xf32, #tpu.memory_space<vmem>>, vector<1x128xf32>
    tpu.vector_store %arg10[%c0_2, %c0_3], %0 {strides = array<i32>} : memref<18x128xf32, #tpu.memory_space<vmem>>, vector<1x128xf32>,
    %c17_4 = arith.constant 17 : index
    %c0_5 = arith.constant 0 : index
    %4 = vector.load %arg10[%c17_4, %c0_5] : memref<18x128xf32, #tpu.memory_space<vmem>>, vector<1x128xf32>
    tpu.vector_store %arg10[%c17_4, %c0_5], %0 {strides = array<i32>} : memref<18x128xf32, #tpu.memory_space<vmem>>, vector<1x128xf32>,
    %c0_6 = arith.constant 0 : index
    %c0_7 = arith.constant 0 : index
    %c0_8 = arith.constant 0 : index
    %5 = vector.load %arg1[%c0_6, %c0_7, %c0_8] : memref<1x16x128xf32, #tpu.memory_space<vmem>>, vector<1x16x128xf32>
    %6 = vector.shape_cast %5 : vector<1x16x128xf32> to vector<16x128xf32>
    %c1 = arith.constant 1 : index
    %c0_9 = arith.constant 0 : index
    %7 = vector.load %arg9[%c1, %c0_9] : memref<18x128xf32, #tpu.memory_space<vmem>>, vector<16x128xf32>
    tpu.vector_store %arg9[%c1, %c0_9], %6 {strides = array<i32>} : memref<18x128xf32, #tpu.memory_space<vmem>>, vector<16x128xf32>,
    %cst_10 = arith.constant 0.000000e+00 : f32
    %8 = vector.broadcast %cst_10 : f32 to vector<16x128xf32>
    %c0_11 = arith.constant 0 : index
    %c0_12 = arith.constant 0 : index
    %9 = vector.load %arg9[%c0_11, %c0_12] : memref<18x128xf32, #tpu.memory_space<vmem>>, vector<16x128xf32>
    %10 = arith.truncf %9 : vector<16x128xf32> to vector<16x128xbf16>
    %c0_13 = arith.constant 0 : index
    %c0_14 = arith.constant 0 : index
    %c0_15 = arith.constant 0 : index
    %11 = vector.load %arg2[%c0_13, %c0_14, %c0_15] : memref<3x128x128xbf16, #tpu.memory_space<vmem>>, vector<1x128x128xbf16>
    %12 = vector.shape_cast %11 : vector<1x128x128xbf16> to vector<128x128xbf16>
    %cst_16 = arith.constant dense<0.000000e+00> : vector<16x128xf32>
    %13 = tpu.matmul %10, %12, %cst_16 {dimension_numbers = #tpu.dot_dimension_numbers<[1], [0], [0], [1], [0, 0, 1, 1], [], []>} : vector<16x128xbf16>, vector<128x128xbf16>, vector<16x128xf32> -> vector<16x128xf32>
    %14 = arith.addf %8, %13 : vector<16x128xf32>
    %c1_17 = arith.constant 1 : index
    %c0_18 = arith.constant 0 : index
    %15 = vector.load %arg9[%c1_17, %c0_18] : memref<18x128xf32, #tpu.memory_space<vmem>>, vector<16x128xf32>
    %16 = arith.truncf %15 : vector<16x128xf32> to vector<16x128xbf16>
    %c1_19 = arith.constant 1 : index
    %c0_20 = arith.constant 0 : index
    %c0_21 = arith.constant 0 : index
    %17 = vector.load %arg2[%c1_19, %c0_20, %c0_21] : memref<3x128x128xbf16, #tpu.memory_space<vmem>>, vector<1x128x128xbf16>
    %18 = vector.shape_cast %17 : vector<1x128x128xbf16> to vector<128x128xbf16>
    %cst_22 = arith.constant dense<0.000000e+00> : vector<16x128xf32>
    %19 = tpu.matmul %16, %18, %cst_22 {dimension_numbers = #tpu.dot_dimension_numbers<[1], [0], [0], [1], [0, 0, 1, 1], [], []>} : vector<16x128xbf16>, vector<128x128xbf16>, vector<16x128xf32> -> vector<16x128xf32>
    %20 = arith.addf %14, %19 : vector<16x128xf32>
    %c2 = arith.constant 2 : index
    %c0_23 = arith.constant 0 : index
    %21 = vector.load %arg9[%c2, %c0_23] : memref<18x128xf32, #tpu.memory_space<vmem>>, vector<16x128xf32>
    %22 = arith.truncf %21 : vector<16x128xf32> to vector<16x128xbf16>
    %c2_24 = arith.constant 2 : index
    %c0_25 = arith.constant 0 : index
    %c0_26 = arith.constant 0 : index
    %23 = vector.load %arg2[%c2_24, %c0_25, %c0_26] : memref<3x128x128xbf16, #tpu.memory_space<vmem>>, vector<1x128x128xbf16>
    %24 = vector.shape_cast %23 : vector<1x128x128xbf16> to vector<128x128xbf16>
    %cst_27 = arith.constant dense<0.000000e+00> : vector<16x128xf32>
    %25 = tpu.matmul %22, %24, %cst_27 {dimension_numbers = #tpu.dot_dimension_numbers<[1], [0], [0], [1], [0, 0, 1, 1], [], []>} : vector<16x128xbf16>, vector<128x128xbf16>, vector<16x128xf32> -> vector<16x128xf32>
    %26 = arith.addf %20, %25 : vector<16x128xf32>
    %c0_28 = arith.constant 0 : index
    %c0_29 = arith.constant 0 : index
    %27 = vector.load %arg4[%c0_28, %c0_29] : memref<1x128xf32, #tpu.memory_space<vmem>>, vector<1x128xf32>
    %28 = vector.broadcast %27 : vector<1x128xf32> to vector<16x128xf32>
    %29 = arith.mulf %26, %28 : vector<16x128xf32>
    %c0_30 = arith.constant 0 : index
    %c0_31 = arith.constant 0 : index
    %30 = vector.load %arg5[%c0_30, %c0_31] : memref<1x128xf32, #tpu.memory_space<vmem>>, vector<1x128xf32>
    %31 = vector.broadcast %30 : vector<1x128xf32> to vector<16x128xf32>
    %32 = arith.addf %29, %31 : vector<16x128xf32>
    %cst_32 = arith.constant 0.000000e+00 : f32
    %33 = vector.broadcast %cst_32 : f32 to vector<16x128xf32>
    %34 = arith.maximumf %32, %33 : vector<16x128xf32>
    %c1_33 = arith.constant 1 : index
    %c0_34 = arith.constant 0 : index
    %35 = vector.load %arg10[%c1_33, %c0_34] : memref<18x128xf32, #tpu.memory_space<vmem>>, vector<16x128xf32>
    tpu.vector_store %arg10[%c1_33, %c0_34], %34 {strides = array<i32>} : memref<18x128xf32, #tpu.memory_space<vmem>>, vector<16x128xf32>,
    %cst_35 = arith.constant 0.000000e+00 : f32
    %36 = vector.broadcast %cst_35 : f32 to vector<16x128xf32>
    %c0_36 = arith.constant 0 : index
    %c0_37 = arith.constant 0 : index
    %37 = vector.load %arg10[%c0_36, %c0_37] : memref<18x128xf32, #tpu.memory_space<vmem>>, vector<16x128xf32>
    %38 = arith.truncf %37 : vector<16x128xf32> to vector<16x128xbf16>
    %c0_38 = arith.constant 0 : index
    %c0_39 = arith.constant 0 : index
    %c0_40 = arith.constant 0 : index
    %39 = vector.load %arg3[%c0_38, %c0_39, %c0_40] : memref<3x128x128xbf16, #tpu.memory_space<vmem>>, vector<1x128x128xbf16>
    %40 = vector.shape_cast %39 : vector<1x128x128xbf16> to vector<128x128xbf16>
    %cst_41 = arith.constant dense<0.000000e+00> : vector<16x128xf32>
    %41 = tpu.matmul %38, %40, %cst_41 {dimension_numbers = #tpu.dot_dimension_numbers<[1], [0], [0], [1], [0, 0, 1, 1], [], []>} : vector<16x128xbf16>, vector<128x128xbf16>, vector<16x128xf32> -> vector<16x128xf32>
    %42 = arith.addf %36, %41 : vector<16x128xf32>
    %c1_42 = arith.constant 1 : index
    %c0_43 = arith.constant 0 : index
    %43 = vector.load %arg10[%c1_42, %c0_43] : memref<18x128xf32, #tpu.memory_space<vmem>>, vector<16x128xf32>
    %44 = arith.truncf %43 : vector<16x128xf32> to vector<16x128xbf16>
    %c1_44 = arith.constant 1 : index
    %c0_45 = arith.constant 0 : index
    %c0_46 = arith.constant 0 : index
    %45 = vector.load %arg3[%c1_44, %c0_45, %c0_46] : memref<3x128x128xbf16, #tpu.memory_space<vmem>>, vector<1x128x128xbf16>
    %46 = vector.shape_cast %45 : vector<1x128x128xbf16> to vector<128x128xbf16>
    %cst_47 = arith.constant dense<0.000000e+00> : vector<16x128xf32>
    %47 = tpu.matmul %44, %46, %cst_47 {dimension_numbers = #tpu.dot_dimension_numbers<[1], [0], [0], [1], [0, 0, 1, 1], [], []>} : vector<16x128xbf16>, vector<128x128xbf16>, vector<16x128xf32> -> vector<16x128xf32>
    %48 = arith.addf %42, %47 : vector<16x128xf32>
    %c2_48 = arith.constant 2 : index
    %c0_49 = arith.constant 0 : index
    %49 = vector.load %arg10[%c2_48, %c0_49] : memref<18x128xf32, #tpu.memory_space<vmem>>, vector<16x128xf32>
    %50 = arith.truncf %49 : vector<16x128xf32> to vector<16x128xbf16>
    %c2_50 = arith.constant 2 : index
    %c0_51 = arith.constant 0 : index
    %c0_52 = arith.constant 0 : index
    %51 = vector.load %arg3[%c2_50, %c0_51, %c0_52] : memref<3x128x128xbf16, #tpu.memory_space<vmem>>, vector<1x128x128xbf16>
    %52 = vector.shape_cast %51 : vector<1x128x128xbf16> to vector<128x128xbf16>
    %cst_53 = arith.constant dense<0.000000e+00> : vector<16x128xf32>
    %53 = tpu.matmul %50, %52, %cst_53 {dimension_numbers = #tpu.dot_dimension_numbers<[1], [0], [0], [1], [0, 0, 1, 1], [], []>} : vector<16x128xbf16>, vector<128x128xbf16>, vector<16x128xf32> -> vector<16x128xf32>
    %54 = arith.addf %48, %53 : vector<16x128xf32>
    %c1_54 = arith.constant 1 : index
    %c0_55 = arith.constant 0 : index
    %55 = vector.load %arg9[%c1_54, %c0_55] : memref<18x128xf32, #tpu.memory_space<vmem>>, vector<16x128xf32>
    tpu.vector_store %arg9[%c1_54, %c0_55], %54 {strides = array<i32>} : memref<18x128xf32, #tpu.memory_space<vmem>>, vector<16x128xf32>,
    %cst_56 = arith.constant 0.000000e+00 : f32
    %56 = vector.broadcast %cst_56 : f32 to vector<16x128xf32>
    %c0_57 = arith.constant 0 : index
    %c0_58 = arith.constant 0 : index
    %57 = vector.load %arg9[%c0_57, %c0_58] : memref<18x128xf32, #tpu.memory_space<vmem>>, vector<16x128xf32>
    %58 = arith.truncf %57 : vector<16x128xf32> to vector<16x128xbf16>
    %c0_59 = arith.constant 0 : index
    %c0_60 = arith.constant 0 : index
    %c0_61 = arith.constant 0 : index
    %59 = vector.load %arg3[%c0_59, %c0_60, %c0_61] : memref<3x128x128xbf16, #tpu.memory_space<vmem>>, vector<1x128x128xbf16>
    %60 = vector.shape_cast %59 : vector<1x128x128xbf16> to vector<128x128xbf16>
    %cst_62 = arith.constant dense<0.000000e+00> : vector<16x128xf32>
    %61 = tpu.matmul %58, %60, %cst_62 {dimension_numbers = #tpu.dot_dimension_numbers<[1], [0], [0], [1], [0, 0, 1, 1], [], []>} : vector<16x128xbf16>, vector<128x128xbf16>, vector<16x128xf32> -> vector<16x128xf32>
    %62 = arith.addf %56, %61 : vector<16x128xf32>
    %c1_63 = arith.constant 1 : index
    %c0_64 = arith.constant 0 : index
    %63 = vector.load %arg9[%c1_63, %c0_64] : memref<18x128xf32, #tpu.memory_space<vmem>>, vector<16x128xf32>
    %64 = arith.truncf %63 : vector<16x128xf32> to vector<16x128xbf16>
    %c1_65 = arith.constant 1 : index
    %c0_66 = arith.constant 0 : index
    %c0_67 = arith.constant 0 : index
    %65 = vector.load %arg3[%c1_65, %c0_66, %c0_67] : memref<3x128x128xbf16, #tpu.memory_space<vmem>>, vector<1x128x128xbf16>
    %66 = vector.shape_cast %65 : vector<1x128x128xbf16> to vector<128x128xbf16>
    %cst_68 = arith.constant dense<0.000000e+00> : vector<16x128xf32>
    %67 = tpu.matmul %64, %66, %cst_68 {dimension_numbers = #tpu.dot_dimension_numbers<[1], [0], [0], [1], [0, 0, 1, 1], [], []>} : vector<16x128xbf16>, vector<128x128xbf16>, vector<16x128xf32> -> vector<16x128xf32>
    %68 = arith.addf %62, %67 : vector<16x128xf32>
    %c2_69 = arith.constant 2 : index
    %c0_70 = arith.constant 0 : index
    %69 = vector.load %arg9[%c2_69, %c0_70] : memref<18x128xf32, #tpu.memory_space<vmem>>, vector<16x128xf32>
    %70 = arith.truncf %69 : vector<16x128xf32> to vector<16x128xbf16>
    %c2_71 = arith.constant 2 : index
    %c0_72 = arith.constant 0 : index
    %c0_73 = arith.constant 0 : index
    %71 = vector.load %arg3[%c2_71, %c0_72, %c0_73] : memref<3x128x128xbf16, #tpu.memory_space<vmem>>, vector<1x128x128xbf16>
    %72 = vector.shape_cast %71 : vector<1x128x128xbf16> to vector<128x128xbf16>
    %cst_74 = arith.constant dense<0.000000e+00> : vector<16x128xf32>
    %73 = tpu.matmul %70, %72, %cst_74 {dimension_numbers = #tpu.dot_dimension_numbers<[1], [0], [0], [1], [0, 0, 1, 1], [], []>} : vector<16x128xbf16>, vector<128x128xbf16>, vector<16x128xf32> -> vector<16x128xf32>
    %74 = arith.addf %68, %73 : vector<16x128xf32>
    %c0_75 = arith.constant 0 : index
    %c0_76 = arith.constant 0 : index
    %75 = vector.load %arg6[%c0_75, %c0_76] : memref<1x128xf32, #tpu.memory_space<vmem>>, vector<1x128xf32>
    %76 = vector.broadcast %75 : vector<1x128xf32> to vector<16x128xf32>
    %77 = arith.mulf %74, %76 : vector<16x128xf32>
    %c0_77 = arith.constant 0 : index
    %c0_78 = arith.constant 0 : index
    %78 = vector.load %arg7[%c0_77, %c0_78] : memref<1x128xf32, #tpu.memory_space<vmem>>, vector<1x128xf32>
    %79 = vector.broadcast %78 : vector<1x128xf32> to vector<16x128xf32>
    %80 = arith.addf %77, %79 : vector<16x128xf32>
    %81 = arith.addf %80, %6 : vector<16x128xf32>
    %cst_79 = arith.constant 0.000000e+00 : f32
    %82 = vector.broadcast %cst_79 : f32 to vector<16x128xf32>
    %83 = arith.maximumf %81, %82 : vector<16x128xf32>
    %c0_80 = arith.constant 0 : index
    %c0_81 = arith.constant 0 : index
    %c0_82 = arith.constant 0 : index
    %84 = vector.load %arg8[%c0_80, %c0_81, %c0_82] : memref<1x16x128xf32, #tpu.memory_space<vmem>>, vector<1x16x128xf32>
    %85 = vector.shape_cast %84 : vector<1x16x128xf32> to vector<16x128xf32>
    %86 = vector.shape_cast %83 : vector<16x128xf32> to vector<1x16x128xf32>
    tpu.vector_store %arg8[%c0_80, %c0_81, %c0_82], %86 {strides = array<i32>} : memref<1x16x128xf32, #tpu.memory_space<vmem>>, vector<1x16x128xf32>,
    return
  }
  func.func @transform_0(%arg0: i32) -> (i32, i32, i32) {
    %c0_i32 = arith.constant 0 : i32
    %c0_i32_0 = arith.constant 0 : i32
    %c0_i32_1 = arith.constant 0 : i32
    return %arg0, %c0_i32, %c0_i32_0 : i32, i32, i32
  }
  func.func @transform_1(%arg0: i32) -> (i32, i32, i32) {
    %c0_i32 = arith.constant 0 : i32
    %c0_i32_0 = arith.constant 0 : i32
    %c0_i32_1 = arith.constant 0 : i32
    %c0_i32_2 = arith.constant 0 : i32
    return %c0_i32, %c0_i32_0, %c0_i32_1 : i32, i32, i32
  }
  func.func @transform_2(%arg0: i32) -> (i32, i32, i32) {
    %c0_i32 = arith.constant 0 : i32
    %c0_i32_0 = arith.constant 0 : i32
    %c0_i32_1 = arith.constant 0 : i32
    %c0_i32_2 = arith.constant 0 : i32
    return %c0_i32, %c0_i32_0, %c0_i32_1 : i32, i32, i32
  }
  func.func @transform_3(%arg0: i32) -> (i32, i32) {
    %c0_i32 = arith.constant 0 : i32
    %c0_i32_0 = arith.constant 0 : i32
    %c0_i32_1 = arith.constant 0 : i32
    return %c0_i32, %c0_i32_0 : i32, i32
  }
  func.func @transform_4(%arg0: i32) -> (i32, i32) {
    %c0_i32 = arith.constant 0 : i32
    %c0_i32_0 = arith.constant 0 : i32
    %c0_i32_1 = arith.constant 0 : i32
    return %c0_i32, %c0_i32_0 : i32, i32
  }
  func.func @transform_5(%arg0: i32) -> (i32, i32) {
    %c0_i32 = arith.constant 0 : i32
    %c0_i32_0 = arith.constant 0 : i32
    %c0_i32_1 = arith.constant 0 : i32
    return %c0_i32, %c0_i32_0 : i32, i32
  }
  func.func @transform_6(%arg0: i32) -> (i32, i32) {
    %c0_i32 = arith.constant 0 : i32
    %c0_i32_0 = arith.constant 0 : i32
    %c0_i32_1 = arith.constant 0 : i32
    return %c0_i32, %c0_i32_0 : i32, i32
  }
  func.func @transform_7(%arg0: i32) -> (i32, i32, i32) {
    %c0_i32 = arith.constant 0 : i32
    %c0_i32_0 = arith.constant 0 : i32
    %c0_i32_1 = arith.constant 0 : i32
    return %arg0, %c0_i32, %c0_i32_0 : i32, i32, i32
  }
}

</mosaic_0001>

<bundles_post_ra>
// kernel: tpu_custom_call.1
= control target key start
LH: loop header
LB: loop body
LE: loop exit
PB: predicated region body
PF: predicated region fallthrough
CT: control target
= control target key end

     0   :  { %12 = vsyncpa [#allocation5], 0  ;;  %s2561_s0 = inlined_call_operand.hbm [shape: f32[2,16,128], index: 0, kind: input, shape index: {}]   ;;  %s2562_s1 = inlined_call_operand.hbm [shape: bf16[3,128,128], index: 1, kind: input, shape index: {}]   ;;  %s2563_s2 = inlined_call_operand.hbm [shape: bf16[3,128,128], index: 2, kind: input, shape index: {}]   ;;  %s2564_s3 = inlined_call_operand.vmem [shape: f32[1,128], index: 3, kind: input, shape index: {}]   ;;  %s2565_s4 = inlined_call_operand.vmem [shape: f32[1,128], index: 4, kind: input, shape index: {}]   ;;  %s2566_s5 = inlined_call_operand.vmem [shape: f32[1,128], index: 5, kind: input, shape index: {}]   ;;  %s2567_s6 = inlined_call_operand.vmem [shape: f32[1,128], index: 6, kind: input, shape index: {}]   ;;  %s2568_s7 = inlined_call_operand.hbm [shape: f32[2,16,128], index: 7, kind: output, shape index: {}]  }
   0x1   :  { %14 = vsyncpa [#allocation5 + $0x1], 0 }
   0x2   :  { %15 = vsyncpa [#allocation8], 0 }
   0x3   :  { %16 = vsyncpa [#allocation6], 0 }
   0x4   :  { %18 = vsyncpa [#allocation6 + $0x1], 0  ;;  %s2207_s24 = smov 0   ;;  %s2209_s25 = smov 0  }
   0x5   :  { %s2211_s26 = smov 0   ;;  %s2213_s27 = smov 0  }
   0x6 LB: > { %s2228_s28 = sadd.s32 4294967295, %s2153_s27   ;;  %s1471_s29 = sadd.s32 4294967294, %s2153_s27   ;;  %s2153_s27 = sphi %s2213_s27, %s2588_s27   ;;  %s2149_s26 = sphi %s2211_s26, %s2587_s26   ;;  %s2145_s25 = sphi %s2209_s25, %s2586_s25   ;;  %s2141_s24 = sphi %s2207_s24, %s2585_s24  }
   0x7   : > { %p44_p0 = scmp.ne.s32.totalorder %s2145_s25, %s2141_s24  ;;  %p2569_p1 = scmp.eq.s32.totalorder %s2228_s28, 0 }
   0x8   : > { %p200_p3 = scmp.eq.s32.totalorder %s1471_s29, 1  ;;  %p1472_p5 = scmp.ge.s32.totalorder %s2153_s27, 1 }
   0x9   : > { %p2237_p4 = por %p2569_p1, %p44_p0  ;;  %p207_p7 = scmp.lt.s32.totalorder %s2153_s27, 3 }
   0xa   : > { %p2242_p6 = por %p200_p3, %p44_p0  ;;  %s2155_s10 = smov [#allocation7]  }
   0xb   : > { %s2572_s30 = scalar_select %p2237_p4, 1, 0 }
   0xc   : > { %s2573_s8 = scalar_select %p2242_p6, 1, 0 }
   0xd   : > { %p2247_p8 = pnand %p1472_p5, %p207_p7  ;;  %s219_s11 = sshll.u32 %s2155_s10, 4  ;;  %s2251_s11 = int_to_ptr.vmem [resolvable:$true] %s219_s11 }
   0xe   : > { %s2156_s13 = smov [#allocation9]   ;;  %s1997_s17 = scalar_lea.hbm %s2562_s1, 3072 }
   0xf   : > { %p1862_p9 = pneg %p2247_p8  ;;  %s232_s14 = sshll.u32 %s2156_s13, 4  ;;  %s2262_s14 = int_to_ptr.vmem [resolvable:$true] %s232_s14 }
  0x10   : > { %p1998_p12 = scmp.ne.s32.totalorder %s2562_s1, %s1997_s17  ;;  %p2004_p5 = scmp.lt.u32.totalorder %s1997_s17, %s2562_s1 }
  0x11   : > { %p2258_p11 = pnand %p1862_p9, %p2569_p1 }
  0x13   : > { %p1999_p13 = pneg %p2258_p11 }
  0x15   : > { %p2000_p0 = pnand %p1999_p13, %p1998_p12 }
  0x17   : > { %p2001_p3 = pneg %p2000_p0 }
  0x19   : > { %p2006_p7 = pnand %p2004_p5, %p2001_p3 }
  0x1b   : > { %2009 = shalt.err (!%p2006_p7)
}
  0x1c   : > { %s2010_s22 = scalar_lea.vmem %s2251_s11, 3072  ;;  %p2018_p2 = scmp.lt.s32.totalorder %s2251_s11, %s2251_s11 }
  0x1d   : > { %p2011_p9 = scmp.ne.s32.totalorder %s2251_s11, %s2010_s22  ;;  %p2019_p12 = scmp.lt.s32.totalorder %s2010_s22, %s2010_s22 }
  0x1f   : > { %p2013_p10 = pnand %p2011_p9, %p1999_p13  ;;  %p2020_p0 = por %p2019_p12, %p2018_p2 }
  0x21   : > { %p2014_p1 = pneg %p2013_p10 }
  0x23   : > { %p2021_p6 = pnand %p2020_p0, %p2014_p1 }
  0x25   : > { %2024 = shalt.err (!%p2021_p6)
}
  0x26   : > { %s2157_s23 = smov 64   ;;  %s2158_s29 = smov 4  }
  0x27   : > { %1865 = dma.hbm_to_vmem [thread:$0]  (!%p2258_p11), %s2562_s1, 3072, %s2251_s11, [#allocation8], %s2157_s23, %s2157_s23, %s2158_s29  }
  0x28   : > { %s2025_s17 = scalar_lea.hbm %s2563_s2, 3072 }
  0x29   : > { %p2026_p2 = scmp.ne.s32.totalorder %s2563_s2, %s2025_s17  ;;  %p2032_p10 = scmp.lt.u32.totalorder %s2025_s17, %s2563_s2 }
  0x2b   : > { %p2028_p1 = pnand %p2026_p2, %p1999_p13 }
  0x2d   : > { %p2029_p6 = pneg %p2028_p1 }
  0x2f   : > { %p2034_p3 = pnand %p2032_p10, %p2029_p6 }
  0x31   : > { %2037 = shalt.err (!%p2034_p3)
}
  0x32   : > { %s2038_s11 = scalar_lea.vmem %s2262_s14, 3072  ;;  %p2046_p12 = scmp.lt.s32.totalorder %s2262_s14, %s2262_s14 }
  0x33   : > { %p2039_p5 = scmp.ne.s32.totalorder %s2262_s14, %s2038_s11  ;;  %p2047_p0 = scmp.lt.s32.totalorder %s2038_s11, %s2038_s11 }
  0x35   : > { %p2041_p7 = pnand %p2039_p5, %p1999_p13  ;;  %p2048_p2 = por %p2047_p0, %p2046_p12 }
  0x37   : > { %p2042_p9 = pneg %p2041_p7 }
  0x39   : > { %p2049_p1 = pnand %p2048_p2, %p2042_p9 }
  0x3b   : > { %2052 = shalt.err (!%p2049_p1)
}
  0x3c   : > { %1868 = dma.hbm_to_vmem [thread:$0]  (!%p2258_p11), %s2563_s2, 3072, %s2262_s14, [#allocation8], %s2157_s23, %s2157_s23, %s2158_s29  }
  0x3d   : > { %s2317_s13 = sadd.s32 1, %s2153_s27   ;;  %s31_s12 = sadd.s32 1, %s2149_s26 }
  0x3e   : > { %s28_s15 = ssub.s32 %s2153_s27, %s2317_s13  ;;  %p38_p13 = scmp.ne.s32.totalorder %s2149_s26, %s2145_s25 }
  0x3f   : > { %p29_p6 = scmp.eq.s32.totalorder %s28_s15, 0  ;;  %p39_p10 = scmp.eq.s32.totalorder %s2153_s27, 0 }
  0x40   : > { %p2576_p3 = scmp.eq.s32.totalorder %s2228_s28, 1  ;;  %p1879_p7 = scmp.lt.s32.totalorder %s2153_s27, 2 }
  0x41   : > { %s2333_s17 = scalar_select %p29_p6, %s2149_s26, %s31_s12  }
  0x42   : > { %p2327_p5 = por %p2576_p3, %p38_p13  ;;  %p40_p9 = por %p39_p10, %p38_p13 }
  0x43   : > { %s258_s18 = sand.u32 1, %s2149_s26   ;;  %s1565_s14 = sshll.u32 %s2153_s27, 8 }
  0x44   : > { %s2577_s16 = scalar_select %p2327_p5, 1, 0 }
  0x45   : > { %s1476_s19 = sshll.u32 %s258_s18, 4  ;;  %s2340_s20 = scalar_lea.hbm %s2561_s0, %s1565_s14 }
  0x46   : > { %s262_s21 = scalar_lea.vmem [#allocation4], %s1476_s19  ;;  %p2344_p11 = pnand %p1879_p7, %p40_p9 }
  0x47   : > { %s269_s11 = sshll.u32 %s262_s21, 4  ;;  %s2348_s10 = scalar_lea.sflag [#allocation5], %s258_s18  ;;  %s2342_s11 = int_to_ptr.vmem [resolvable:$true] %s269_s11 }
  0x48   : > { %s2053_s12 = scalar_lea.hbm %s2340_s20, 256  ;;  %p2055_p0 = pneg %p2344_p11 }
  0x49   : > { %p2054_p12 = scmp.ne.s32.totalorder %s2340_s20, %s2053_s12  ;;  %s2058_s14 = scalar_lea.hbm %s2561_s0, 512 }
  0x4a   : > { %p2059_p13 = scmp.lt.u32.totalorder %s2340_s20, %s2561_s0  ;;  %p2060_p6 = scmp.lt.u32.totalorder %s2058_s14, %s2053_s12 }
  0x4b   : > { %p2056_p2 = pnand %p2055_p0, %p2054_p12  ;;  %p2062_p3 = scmp.lt.u32.totalorder %s2053_s12, %s2340_s20 }
  0x4c   : > { %p2061_p10 = por %p2060_p6, %p2059_p13 }
  0x4d   : > { %p2057_p1 = pneg %p2056_p2 }
  0x4e   : > { %p2063_p7 = por %p2062_p3, %p2061_p10 }
  0x50   : > { %p2064_p9 = pnand %p2063_p7, %p2057_p1 }
  0x52   : > { %2067 = shalt.err (!%p2064_p9)
}
  0x53   : > { %s2068_s18 = scalar_lea.vmem %s2342_s11, 256  ;;  %s2159_s21 = smov [#allocation4]  }
  0x54   : > { %p2069_p12 = scmp.ne.s32.totalorder %s2342_s11, %s2068_s18  ;;  %s2073_s15 = sshll.u32 %s2159_s21, 4  ;;  %s2074_s15 = int_to_ptr.vmem [resolvable:$false] %s2073_s15 }
  0x55   : > { %s2075_s19 = scalar_lea.vmem %s2074_s15, 512  ;;  %p2076_p4 = scmp.lt.s32.totalorder %s2342_s11, %s2074_s15 }
  0x56   : > { %p2071_p2 = pnand %p2069_p12, %p2055_p0  ;;  %p2077_p13 = scmp.lt.s32.totalorder %s2075_s19, %s2068_s18 }
  0x58   : > { %p2072_p5 = pneg %p2071_p2  ;;  %p2078_p6 = por %p2077_p13, %p2076_p4 }
  0x5a   : > { %p2079_p10 = pnand %p2078_p6, %p2072_p5 }
  0x5c   : > { %2082 = shalt.err (!%p2079_p10)
}
  0x5d   : > { %s2160_s12 = smov 128   ;;  %s2161_s14 = smov 8  }
  0x5e   : > { %1872 = dma.hbm_to_vmem [thread:$0]  (!%p2344_p11), %s2340_s20, 256, %s2342_s11, %s2348_s10, %s2160_s12, %s2160_s12, %s2161_s14  }
  0x5f   : > { %281 = sbr.rel (%p2247_p8) target bundleno = 977 (0x3d1), region = 48  ;;  %s2379_s23 = sand.u32 (!%p2247_p8), 1, %s2145_s25  }
  0x60   : > { %s1480_s29 = sshll.u32 (!%p2247_p8), %s2379_s23, 4  ;;  %s284_s18 = scalar_lea.sflag (!%p2247_p8), [#allocation5], %s2379_s23 }
  0x61   : > { %s287_s21 = scalar_lea.vmem (!%p2247_p8), [#allocation4], %s1480_s29  ;;  %p2579_p4 = scmp.ne.s32.totalorder (!%p2247_p8), %s2572_s30, 0 }
  0x66   : > { %2128 = dma.done.wait (%p2579_p4), %s284_s18, 256  }
  0x67   : > { %2130 = vsyncadd (%p2579_p4), %s284_s18, 4294967040  ;;  %p2580_p5 = scmp.eq.s32.totalorder %s2228_s28, 0 }
  0x69   : > { %2132 = dma.done.wait (%p2580_p5), [#allocation8], 6144   ;;  %p2581_p8 = pmov %p2580_p5 }
  0x6a   : > { %v2162_v0 = vmov 0.0   ;;  %vm2163_vm0 = vmmov 0   ;;  %v1925_v1 = vld [vmem:[#allocation7] sm:$0xff]   ;;  %v1926_v2 = vld [vmem:[#allocation7 + $0x8] sm:$0xff]   ;;  %v1927_v3 = vld [vmem:[#allocation7 + $0x10] sm:$0xff]   ;;  %s325_s12 = scalar_lea.vmem [#allocation10], %s1480_s29 }
  0x6b   : > { %2134 = vsyncadd (%p2581_p8), [#allocation8], 4294961152  ;;  %1668 = vmatprep.subr.bf16.mxu0 %v2162_v0  ;;  %327 = vst [vmem:[#allocation2] sm:$0x1] %v2162_v0  ;;  %1648 = vmatprep.subr.bf16.mxu1 %v2162_v0  ;;  %v1933_v4 = vld [vmem:[#allocation7 + $0x40] sm:$0xff]   ;;  %v2407_v6 = vld [vmem:[%s287_s21 + $0x8] sm:$0xff] }
  0x6c   : > { %328 = vst [vmem:[#allocation2 + $0x11] sm:$0x1] %v2162_v0  ;;  %329 = vst [vmem:[#allocation3] sm:$0x1] %v2162_v0  ;;  %1684 = vmatprep.mubr.msk.bf16.mxu0 %vm2163_vm0, %v2162_v0  ;;  %1664 = vmatprep.mubr.msk.bf16.mxu1 %vm2163_vm0, %v2162_v0  ;;  %v2405_v5 = vld [vmem:[%s287_s21] sm:$0xff]  ;;  %v1928_v7 = vld [vmem:[#allocation7 + $0x18] sm:$0xff]  }
  0x6d   : > { %330 = vst [vmem:[#allocation3 + $0x11] sm:$0x1] %v2162_v0  ;;  %1669 = vmatpush3.bf16.msra.mxu0 %v1925_v1  ;;  %1649 = vmatpush3.bf16.msra.mxu1 %v1933_v4  ;;  %333 = vst [vmem:[#allocation2 + $0x1] sm:$0xff] %v2405_v5  ;;  %v1935_v8 = vld [vmem:[#allocation7 + $0x48] sm:$0xff]   ;;  %v1929_v9 = vld [vmem:[#allocation7 + $0x20] sm:$0xff]   ;;  %v356_v26 = vpack.c.bf16 %v2407_v6, %v2405_v5  ;;  %s1379_s14 = sshll.u32 %s325_s12, 4  ;;  %s2511_s14 = int_to_ptr.vmem [resolvable:$true] %s1379_s14 }
  0x6e   : > { %1670 = vmatprep.subr.bf16.mxu0 %v2162_v0  ;;  %334 = vst [vmem:[#allocation2 + $0x9] sm:$0xff] %v2407_v6  ;;  %1650 = vmatprep.subr.bf16.mxu1 %v2162_v0  ;;  %v1937_v10 = vld [vmem:[#allocation7 + $0x50] sm:$0xff]   ;;  %v1930_v11 = vld [vmem:[#allocation7 + $0x28] sm:$0xff]   ;;  %v1939_v12 = vld [vmem:[#allocation7 + $0x58] sm:$0xff]   ;;  %s1566_s18 = sshll.u32 %s2228_s28, 8  ;;  %s1366_s29 = scalar_lea.sflag [#allocation6], %s2379_s23 }
  0x6f   : > { %v1931_v13 = vld [vmem:[#allocation7 + $0x30] sm:$0xff]   ;;  %v1941_v14 = vld [vmem:[#allocation7 + $0x60] sm:$0xff]   ;;  %v1932_v15 = vld [vmem:[#allocation7 + $0x38] sm:$0xff]   ;;  %s2517_s9 = scalar_lea.hbm %s2568_s7, %s1566_s18  ;;  %s2083_s20 = scalar_lea.vmem %s2511_s14, 256 }
  0x70   : > { %v1943_v18 = vld [vmem:[#allocation7 + $0x68] sm:$0xff]   ;;  %v1934_v19 = vld [vmem:[#allocation7 + $0x80] sm:$0xff]   ;;  %v1945_v20 = vld [vmem:[#allocation7 + $0x70] sm:$0xff]   ;;  %p2084_p11 = scmp.ne.s32.totalorder %s2511_s14, %s2083_s20  ;;  %p2582_p0 = scmp.ne.s32.totalorder %s2577_s16, 0 }
  0x71   : > { %1671 = vmatpush3.bf16.msra.mxu0 %v1926_v2  ;;  %1651 = vmatpush3.bf16.msra.mxu1 %v1935_v8  ;;  %v1936_v22 = vld [vmem:[#allocation7 + $0x88] sm:$0xff]   ;;  %v1947_v23 = vld [vmem:[#allocation7 + $0x78] sm:$0xff]   ;;  %v1938_v24 = vld [vmem:[#allocation7 + $0x90] sm:$0xff]   ;;  %s2164_s28 = smov [#allocation10]  }
  0x72   : > { %1672 = vmatprep.subr.bf16.mxu0 %v2162_v0  ;;  %1652 = vmatprep.subr.bf16.mxu1 %v2162_v0  ;;  %v1949_v25 = vld [vmem:[#allocation9 + $0x40] sm:$0xff]   ;;  %v1940_v27 = vld [vmem:[#allocation7 + $0x98] sm:$0xff]   ;;  %v1950_v28 = vld [vmem:[#allocation9 + $0x48] sm:$0xff]   ;;  %p2085_p1 = pnand %p2084_p11, %p2582_p0  ;;  %s2087_s11 = sshll.u32 %s2164_s28, 4  ;;  %s2088_s11 = int_to_ptr.vmem [resolvable:$false] %s2087_s11 }
  0x73   : > { %v1942_v29 = vld [vmem:[#allocation7 + $0xa0] sm:$0xff]   ;;  %v1944_v30 = vld [vmem:[#allocation7 + $0xa8] sm:$0xff]   ;;  %v1946_v31 = vld [vmem:[#allocation7 + $0xb0] sm:$0xff]   ;;  %s2089_s22 = scalar_lea.vmem %s2088_s11, 512  ;;  %p2090_p7 = scmp.lt.s32.totalorder %s2511_s14, %s2088_s11 }
  0x74   : > { %v335_v16 = vld [vmem:[#allocation2] sm:$0xff]  ;;  %v1948_v32 = vld [vmem:[#allocation7 + $0xb8] sm:$0xff]   ;;  %v1953_v38 = vld [vmem:[#allocation9 + $0x60] sm:$0xff]   ;;  %p2086_p3 = pneg %p2085_p1  ;;  %p2091_p9 = scmp.lt.s32.totalorder %s2089_s22, %s2083_s20 }
  0x75   : > { %1673 = vmatpush3.bf16.msra.mxu0 %v1927_v3  ;;  %1653 = vmatpush3.bf16.msra.mxu1 %v1937_v10  ;;  %v336_v17 = vld [vmem:[#allocation2 + $0x8] sm:$0xff]  ;;  %v1951_v36 = vld [vmem:[#allocation9 + $0x50] sm:$0xff]   ;;  %v1954_v39 = vld [vmem:[#allocation9 + $0x68] sm:$0xff]  }
  0x76   : > { %1674 = vmatprep.subr.bf16.mxu0 %v2162_v0  ;;  %1654 = vmatprep.subr.bf16.mxu1 %v2162_v0  ;;  %v337_v21 = vpack.c.bf16 %v336_v17, %v335_v16  ;;  %v552_v33 = vld [vmem:[#allocation2 + $0x2] sm:$0xff]  ;;  %v553_v34 = vld [vmem:[#allocation2 + $0xa] sm:$0xff]  ;;  %v1974_v43 = vld [vmem:[#allocation9 + $0x48] sm:$0xff]   ;;  %p2092_p12 = por %p2091_p9, %p2090_p7 }
  0x77   : > { %v554_v35 = vpack.c.bf16 %v553_v34, %v552_v33  ;;  %v1952_v37 = vld [vmem:[#allocation9 + $0x58] sm:$0xff]   ;;  %v1955_v40 = vld [vmem:[#allocation9 + $0x70] sm:$0xff]   ;;  %v1973_v42 = vld [vmem:[#allocation9 + $0x40] sm:$0xff]  }
  0x78   : > { %v1956_v41 = vld [vmem:[#allocation9 + $0x78] sm:$0xff]   ;;  %v1975_v44 = vld [vmem:[#allocation9 + $0x50] sm:$0xff]   ;;  %v1977_v46 = vld [vmem:[#allocation9 + $0x60] sm:$0xff]   ;;  %p2093_p2 = pnand %p2092_p12, %p2086_p3 }
  0x79   : > { %1675 = vmatpush3.bf16.msra.mxu0 %v1928_v7  ;;  %1655 = vmatpush3.bf16.msra.mxu1 %v1939_v12  ;;  %v1976_v45 = vld [vmem:[#allocation9 + $0x58] sm:$0xff]   ;;  %v1508_v52 = vld [vmem:[%s2564_s3] ss:$0 sm:$0xff]  ;;  %v1957_v2 = vld [vmem:[#allocation9] sm:$0xff]  }
  0x7a   : > { %1676 = vmatprep.subr.bf16.mxu0 %v2162_v0  ;;  %1656 = vmatprep.subr.bf16.mxu1 %v2162_v0  ;;  %v1509_v55 = vld [vmem:[%s2565_s4] ss:$0 sm:$0xff]  ;;  %v1958_v4 = vld [vmem:[#allocation9 + $0x8] sm:$0xff]   ;;  %v1960_v8 = vld [vmem:[#allocation9 + $0x18] sm:$0xff]  }
  0x7b   : > { %v1959_v7 = vld [vmem:[#allocation9 + $0x10] sm:$0xff]   ;;  %v1962_v10 = vld [vmem:[#allocation9 + $0x28] sm:$0xff]   ;;  %v1964_v12 = vld [vmem:[#allocation9 + $0x38] sm:$0xff]  }
  0x7c   : > { %v1966_v17 = vld [vmem:[#allocation9 + $0x88] sm:$0xff]   ;;  %v1981_v33 = vld [vmem:[#allocation9] sm:$0xff]  }
  0x7d   : > { %1677 = vmatpush3.bf16.msra.mxu0 %v1929_v9  ;;  %1657 = vmatpush3.bf16.msra.mxu1 %v1941_v14  ;;  %v1961_v9 = vld [vmem:[#allocation9 + $0x20] sm:$0xff]  }
  0x7e   : > { %1678 = vmatprep.subr.bf16.mxu0 %v2162_v0  ;;  %1658 = vmatprep.subr.bf16.mxu1 %v2162_v0 }
  0x81   : > { %1679 = vmatpush3.bf16.msra.mxu0 %v1930_v11  ;;  %1659 = vmatpush3.bf16.msra.mxu1 %v1943_v18  ;;  %v1963_v11 = vld [vmem:[#allocation9 + $0x30] sm:$0xff]  }
  0x82   : > { %1680 = vmatprep.subr.bf16.mxu0 %v2162_v0  ;;  %1660 = vmatprep.subr.bf16.mxu1 %v2162_v0  ;;  %v1967_v18 = vld [vmem:[#allocation9 + $0x90] sm:$0xff]  }
  0x85   : > { %1681 = vmatpush3.bf16.msra.mxu0 %v1931_v13  ;;  %1661 = vmatpush3.bf16.msra.mxu1 %v1945_v20  ;;  %v1969_v20 = vld [vmem:[#allocation9 + $0xa0] sm:$0xff]  }
  0x86   : > { %1682 = vmatprep.subr.bf16.mxu0 %v2162_v0  ;;  %1662 = vmatprep.subr.bf16.mxu1 %v2162_v0 }
  0x89   : > { %1683 = vmatpush3.bf16.msra.mxu0 %v1932_v15  ;;  %1663 = vmatpush3.bf16.msra.mxu1 %v1947_v23  ;;  %v1965_v15 = vld [vmem:[#allocation9 + $0x80] sm:$0xff]   ;;  %v1972_v23 = vld [vmem:[#allocation9 + $0xb8] sm:$0xff]  }
  0x8a   : > { %1688 = vmatprep.subr.bf16.mxu0 %v2162_v0  ;;  %1708 = vmatprep.subr.bf16.mxu1 %v2162_v0 }
  0x8c   : > { %1685 = vmatmul.mubr.bf16.vlgmr.msra.gmra.mrb[0].mxu0 %v337_v21  ;;  %1665 = vmatmul.mubr.bf16.vlgmr.msra.gmra.mrb[0].mxu1 %v356_v26  ;;  %v1970_v21 = vld [vmem:[#allocation9 + $0xa8] sm:$0xff]  }
  0x8d   : > { %1689 = vmatpush3.bf16.msra.mxu0 %v1934_v19  ;;  %1704 = vmatprep.mubr.msk.bf16.mxu0 %vm2163_vm0, %v2162_v0  ;;  %v1968_v19 = vld [vmem:[#allocation9 + $0x98] sm:$0xff]  }
  0x8e   : > { %1690 = vmatprep.subr.bf16.mxu0 %v2162_v0  ;;  %1709 = vmatpush3.bf16.msra.mxu1 %v1949_v25 }
  0x8f   : > { %1710 = vmatprep.subr.bf16.mxu1 %v2162_v0  ;;  %1724 = vmatprep.mubr.msk.bf16.mxu1 %vm2163_vm0, %v2162_v0 }
  0x91   : > { %1691 = vmatpush3.bf16.msra.mxu0 %v1936_v22  ;;  %v1971_v22 = vld [vmem:[#allocation9 + $0xb0] sm:$0xff]  }
  0x92   : > { %1692 = vmatprep.subr.bf16.mxu0 %v2162_v0  ;;  %1711 = vmatpush3.bf16.msra.mxu1 %v1950_v28  ;;  %v1979_v28 = vld [vmem:[#allocation9 + $0x70] sm:$0xff]  }
  0x93   : > { %1712 = vmatprep.subr.bf16.mxu1 %v2162_v0 }
  0x95   : > { %1693 = vmatpush3.bf16.msra.mxu0 %v1938_v24 }
  0x96   : > { %1694 = vmatprep.subr.bf16.mxu0 %v2162_v0  ;;  %1713 = vmatpush3.bf16.msra.mxu1 %v1951_v36  ;;  %v1982_v36 = vld [vmem:[#allocation9 + $0x8] sm:$0xff]  }
  0x97   : > { %1714 = vmatprep.subr.bf16.mxu1 %v2162_v0 }
  0x99   : > { %1695 = vmatpush3.bf16.msra.mxu0 %v1940_v27  ;;  %v1978_v27 = vld [vmem:[#allocation9 + $0x68] sm:$0xff]  }
  0x9a   : > { %1696 = vmatprep.subr.bf16.mxu0 %v2162_v0  ;;  %1715 = vmatpush3.bf16.msra.mxu1 %v1952_v37  ;;  %v1983_v37 = vld [vmem:[#allocation9 + $0x10] sm:$0xff]  }
  0x9b   : > { %1716 = vmatprep.subr.bf16.mxu1 %v2162_v0 }
  0x9d   : > { %1697 = vmatpush3.bf16.msra.mxu0 %v1942_v29  ;;  %v1980_v29 = vld [vmem:[#allocation9 + $0x78] sm:$0xff]  }
  0x9e   : > { %1698 = vmatprep.subr.bf16.mxu0 %v2162_v0  ;;  %1717 = vmatpush3.bf16.msra.mxu1 %v1953_v38  ;;  %v1984_v38 = vld [vmem:[#allocation9 + $0x18] sm:$0xff]  }
  0x9f   : > { %1718 = vmatprep.subr.bf16.mxu1 %v2162_v0 }
  0xa1   : > { %1699 = vmatpush3.bf16.msra.mxu0 %v1944_v30 }
  0xa2   : > { %1700 = vmatprep.subr.bf16.mxu0 %v2162_v0  ;;  %1719 = vmatpush3.bf16.msra.mxu1 %v1954_v39  ;;  %v1985_v39 = vld [vmem:[#allocation9 + $0x20] sm:$0xff]  }
  0xa3   : > { %1720 = vmatprep.subr.bf16.mxu1 %v2162_v0 }
  0xa5   : > { %1701 = vmatpush3.bf16.msra.mxu0 %v1946_v31 }
  0xa6   : > { %1702 = vmatprep.subr.bf16.mxu0 %v2162_v0  ;;  %1721 = vmatpush3.bf16.msra.mxu1 %v1955_v40  ;;  %v1986_v40 = vld [vmem:[#allocation9 + $0x28] sm:$0xff]  }
  0xa7   : > { %1722 = vmatprep.subr.bf16.mxu1 %v2162_v0 }
  0xa9   : > { %1703 = vmatpush3.bf16.msra.mxu0 %v1948_v32 }
  0xaa   : > { %1768 = vmatprep.subr.bf16.mxu0 %v2162_v0  ;;  %1723 = vmatpush3.bf16.msra.mxu1 %v1956_v41  ;;  %v1987_v41 = vld [vmem:[#allocation9 + $0x30] sm:$0xff]  }
  0xab   : > { %1728 = vmatprep.subr.bf16.mxu1 %v2162_v0 }
  0xac   : > { %1705 = vmatmul.mubr.bf16.vlgmr.msra.gmra.mrb[0].mxu0 %v554_v35 }
  0xad   : > { %1784 = vmatprep.mubr.msk.bf16.mxu0 %vm2163_vm0, %v2162_v0  ;;  %1769 = vmatpush3.bf16.msra.mxu0 %v1973_v42  ;;  %v1988_v42 = vld [vmem:[#allocation9 + $0x38] sm:$0xff]  }
  0xae   : > { %1770 = vmatprep.subr.bf16.mxu0 %v2162_v0 }
  0xb1   : > { %1771 = vmatpush3.bf16.msra.mxu0 %v1974_v43 }
  0xb2   : > { %1772 = vmatprep.subr.bf16.mxu0 %v2162_v0 }
  0xb5   : > { %1773 = vmatpush3.bf16.msra.mxu0 %v1975_v44 }
  0xb6   : > { %1774 = vmatprep.subr.bf16.mxu0 %v2162_v0 }
  0xb9   : > { %1775 = vmatpush3.bf16.msra.mxu0 %v1976_v45  ;;  %v1989_v45 = vld [vmem:[#allocation9 + $0x80] sm:$0xff]  }
  0xba   : > { %1776 = vmatprep.subr.bf16.mxu0 %v2162_v0 }
  0xbd   : > { %1777 = vmatpush3.bf16.msra.mxu0 %v1977_v46 }
  0xbe   : > { %1778 = vmatprep.subr.bf16.mxu0 %v2162_v0 }
  0xc1   : > { %1779 = vmatpush3.bf16.msra.mxu0 %v1978_v27 }
  0xc2   : > { %1780 = vmatprep.subr.bf16.mxu0 %v2162_v0 }
  0xc5   : > { %1781 = vmatpush3.bf16.msra.mxu0 %v1979_v28 }
  0xc6   : > { %1782 = vmatprep.subr.bf16.mxu0 %v2162_v0 }
  0xc9   : > { %1783 = vmatpush3.bf16.msra.mxu0 %v1980_v29 }
  0xca   : > { %1788 = vmatprep.subr.bf16.mxu0 %v2162_v0 }
 0x15f   : > { %v456_v47 = vpop.f32.mrb[0].mxu1 }
 0x160   : > { %v1666_v48 = vpop.f32.mrb[1].mxu1 }
 0x161   : > { %v459_v49 = vpop.f32.mrb[2].mxu1  ;;  %v1991_v48 = vld [vmem:[#allocation9 + $0x90] sm:$0xff]  }
 0x162   : > { %v1667_v50 = vpop.f32.mrb[3].mxu1 }
 0x163   : > { %v1993_v50 = vld [vmem:[#allocation9 + $0xa0] sm:$0xff]  }
 0x17f   : > { %v654_v51 = vpop.f32.mrb[0].mxu0 }
 0x180   : > { %v1828_v53 = vadd.f32 %v654_v51, %v456_v47  ;;  %v1706_v54 = vpop.f32.mrb[1].mxu0  ;;  %v1990_v47 = vld [vmem:[#allocation9 + $0x88] sm:$0xff]  }
 0x181   : > { %v657_v56 = vpop.f32.mrb[2].mxu0  ;;  %v1994_v51 = vld [vmem:[#allocation9 + $0xa8] sm:$0xff]  }
 0x182   : > { %v670_v57 = vmul.f32 %v1828_v53, %v1508_v52  ;;  %v1829_v58 = vadd.f32 %v657_v56, %v459_v49  ;;  %v1707_v59 = vpop.f32.mrb[3].mxu0  ;;  %v1992_v49 = vld [vmem:[#allocation9 + $0x98] sm:$0xff]  }
 0x183   : > { %v1996_v53 = vld [vmem:[#allocation9 + $0xb8] sm:$0xff]   ;;  %v1559_v59 = vld [vmem:[%s2567_s6] ss:$0 sm:$0xff] }
 0x184   : > { %v679_v60 = vadd.f32 %v1509_v55, %v670_v57  ;;  %v671_v61 = vmul.f32 %v1829_v58, %v1508_v52  ;;  %v1995_v52 = vld [vmem:[#allocation9 + $0xb0] sm:$0xff]  }
 0x185   : > { %v1558_v57 = vld [vmem:[%s2566_s5] ss:$0 sm:$0xff] }
 0x186   : > { %v681_v62 = vmax.f32 %v679_v60, 0.0  ;;  %v680_v63 = vadd.f32 %v1509_v55, %v671_v61 }
 0x188   : > { %683 = vst [vmem:[#allocation3 + $0x1] sm:$0xff] %v681_v62  ;;  %v682_v1 = vmax.f32 %v680_v63, 0.0 }
 0x18a   : > { %684 = vst [vmem:[#allocation3 + $0x9] sm:$0xff] %v682_v1  ;;  %v706_v3 = vpack.c.bf16 %v682_v1, %v681_v62 }
 0x18c   : > { %1725 = vmatmul.mubr.bf16.vlgmr.msra.gmra.mrb[4].mxu1 %v706_v3 }
 0x18d   : > { %1729 = vmatpush3.bf16.msra.mxu1 %v1957_v2  ;;  %1744 = vmatprep.mubr.msk.bf16.mxu1 %vm2163_vm0, %v2162_v0 }
 0x18e   : > { %1730 = vmatprep.subr.bf16.mxu1 %v2162_v0 }
 0x18f   : > { %v685_v14 = vld [vmem:[#allocation3] sm:$0xff] }
 0x191   : > { %1731 = vmatpush3.bf16.msra.mxu1 %v1958_v4  ;;  %v686_v13 = vld [vmem:[#allocation3 + $0x8] sm:$0xff] }
 0x192   : > { %1732 = vmatprep.subr.bf16.mxu1 %v2162_v0  ;;  %v687_v16 = vpack.c.bf16 %v686_v13, %v685_v14  ;;  %v902_v24 = vld [vmem:[#allocation3 + $0x2] sm:$0xff]  ;;  %v903_v25 = vld [vmem:[#allocation3 + $0xa] sm:$0xff] }
 0x193   : > { %v904_v26 = vpack.c.bf16 %v903_v25, %v902_v24 }
 0x195   : > { %1733 = vmatpush3.bf16.msra.mxu1 %v1959_v7 }
 0x196   : > { %1734 = vmatprep.subr.bf16.mxu1 %v2162_v0 }
 0x199   : > { %1735 = vmatpush3.bf16.msra.mxu1 %v1960_v8 }
 0x19a   : > { %1736 = vmatprep.subr.bf16.mxu1 %v2162_v0 }
 0x19d   : > { %1737 = vmatpush3.bf16.msra.mxu1 %v1961_v9 }
 0x19e   : > { %1738 = vmatprep.subr.bf16.mxu1 %v2162_v0 }
 0x1a1   : > { %1739 = vmatpush3.bf16.msra.mxu1 %v1962_v10 }
 0x1a2   : > { %1740 = vmatprep.subr.bf16.mxu1 %v2162_v0 }
 0x1a5   : > { %1741 = vmatpush3.bf16.msra.mxu1 %v1963_v11 }
 0x1a6   : > { %1742 = vmatprep.subr.bf16.mxu1 %v2162_v0 }
 0x1a9   : > { %1743 = vmatpush3.bf16.msra.mxu1 %v1964_v12 }
 0x1aa   : > { %1748 = vmatprep.subr.bf16.mxu1 %v2162_v0 }
 0x1ac   : > { %1745 = vmatmul.mubr.bf16.vlgmr.msra.gmra.mrb[4].mxu1 %v687_v16 }
 0x1ad   : > { %1749 = vmatpush3.bf16.msra.mxu1 %v1965_v15  ;;  %1764 = vmatprep.mubr.msk.bf16.mxu1 %vm2163_vm0, %v2162_v0 }
 0x1ae   : > { %1750 = vmatprep.subr.bf16.mxu1 %v2162_v0 }
 0x1b1   : > { %1751 = vmatpush3.bf16.msra.mxu1 %v1966_v17 }
 0x1b2   : > { %1752 = vmatprep.subr.bf16.mxu1 %v2162_v0 }
 0x1b5   : > { %1753 = vmatpush3.bf16.msra.mxu1 %v1967_v18 }
 0x1b6   : > { %1754 = vmatprep.subr.bf16.mxu1 %v2162_v0 }
 0x1b9   : > { %1755 = vmatpush3.bf16.msra.mxu1 %v1968_v19 }
 0x1ba   : > { %1756 = vmatprep.subr.bf16.mxu1 %v2162_v0 }
 0x1bd   : > { %1757 = vmatpush3.bf16.msra.mxu1 %v1969_v20 }
 0x1be   : > { %1758 = vmatprep.subr.bf16.mxu1 %v2162_v0 }
 0x1c1   : > { %1759 = vmatpush3.bf16.msra.mxu1 %v1970_v21 }
 0x1c2   : > { %1760 = vmatprep.subr.bf16.mxu1 %v2162_v0 }
 0x1c5   : > { %1761 = vmatpush3.bf16.msra.mxu1 %v1971_v22 }
 0x1c6   : > { %1762 = vmatprep.subr.bf16.mxu1 %v2162_v0 }
 0x1c9   : > { %1763 = vmatpush3.bf16.msra.mxu1 %v1972_v23 }
 0x1cc   : > { %1765 = vmatmul.mubr.bf16.vlgmr.msra.gmra.mrb[4].mxu1 %v904_v26 }
 0x29f   : > { %v1004_v30 = vpop.f32.mrb[4].mxu1 }
 0x2a0   : > { %1013 = vst [vmem:[#allocation2 + $0x1] sm:$0xff] %v1004_v30  ;;  %v1766_v31 = vpop.f32.mrb[5].mxu1 }
 0x2a1   : > { %v1007_v32 = vpop.f32.mrb[6].mxu1 }
 0x2a2   : > { %1014 = vst [vmem:[#allocation2 + $0x9] sm:$0xff] %v1007_v32  ;;  %v1767_v34 = vpop.f32.mrb[7].mxu1  ;;  %v1036_v35 = vpack.c.bf16 %v1007_v32, %v1004_v30 }
 0x2a4   : > { %1785 = vmatmul.mubr.bf16.vlgmr.msra.gmra.mrb[4].mxu0 %v1036_v35 }
 0x2a5   : > { %1789 = vmatpush3.bf16.msra.mxu0 %v1981_v33  ;;  %1804 = vmatprep.mubr.msk.bf16.mxu0 %vm2163_vm0, %v2162_v0 }
 0x2a6   : > { %1790 = vmatprep.subr.bf16.mxu0 %v2162_v0 }
 0x2a7   : > { %v1015_v44 = vld [vmem:[#allocation2] sm:$0xff] }
 0x2a9   : > { %1791 = vmatpush3.bf16.msra.mxu0 %v1982_v36  ;;  %v1016_v43 = vld [vmem:[#allocation2 + $0x8] sm:$0xff] }
 0x2aa   : > { %1792 = vmatprep.subr.bf16.mxu0 %v2162_v0  ;;  %v1017_v46 = vpack.c.bf16 %v1016_v43, %v1015_v44  ;;  %v1231_v54 = vld [vmem:[#allocation2 + $0x2] sm:$0xff]  ;;  %v1232_v55 = vld [vmem:[#allocation2 + $0xa] sm:$0xff] }
 0x2ab   : > { %v1233_v56 = vpack.c.bf16 %v1232_v55, %v1231_v54 }
 0x2ad   : > { %1793 = vmatpush3.bf16.msra.mxu0 %v1983_v37 }
 0x2ae   : > { %1794 = vmatprep.subr.bf16.mxu0 %v2162_v0 }
 0x2b1   : > { %1795 = vmatpush3.bf16.msra.mxu0 %v1984_v38 }
 0x2b2   : > { %1796 = vmatprep.subr.bf16.mxu0 %v2162_v0 }
 0x2b5   : > { %1797 = vmatpush3.bf16.msra.mxu0 %v1985_v39 }
 0x2b6   : > { %1798 = vmatprep.subr.bf16.mxu0 %v2162_v0 }
 0x2b9   : > { %1799 = vmatpush3.bf16.msra.mxu0 %v1986_v40 }
 0x2ba   : > { %1800 = vmatprep.subr.bf16.mxu0 %v2162_v0 }
 0x2bd   : > { %1801 = vmatpush3.bf16.msra.mxu0 %v1987_v41 }
 0x2be   : > { %1802 = vmatprep.subr.bf16.mxu0 %v2162_v0 }
 0x2c1   : > { %1803 = vmatpush3.bf16.msra.mxu0 %v1988_v42 }
 0x2c2   : > { %1808 = vmatprep.subr.bf16.mxu0 %v2162_v0 }
 0x2c4   : > { %1805 = vmatmul.mubr.bf16.vlgmr.msra.gmra.mrb[4].mxu0 %v1017_v46 }
 0x2c5   : > { %1809 = vmatpush3.bf16.msra.mxu0 %v1989_v45  ;;  %1824 = vmatprep.mubr.msk.bf16.mxu0 %vm2163_vm0, %v2162_v0 }
 0x2c6   : > { %1810 = vmatprep.subr.bf16.mxu0 %v2162_v0 }
 0x2c9   : > { %1811 = vmatpush3.bf16.msra.mxu0 %v1990_v47 }
 0x2ca   : > { %1812 = vmatprep.subr.bf16.mxu0 %v2162_v0 }
 0x2cd   : > { %1813 = vmatpush3.bf16.msra.mxu0 %v1991_v48 }
 0x2ce   : > { %1814 = vmatprep.subr.bf16.mxu0 %v2162_v0 }
 0x2d1   : > { %1815 = vmatpush3.bf16.msra.mxu0 %v1992_v49 }
 0x2d2   : > { %1816 = vmatprep.subr.bf16.mxu0 %v2162_v0 }
 0x2d5   : > { %1817 = vmatpush3.bf16.msra.mxu0 %v1993_v50 }
 0x2d6   : > { %1818 = vmatprep.subr.bf16.mxu0 %v2162_v0 }
 0x2d9   : > { %1819 = vmatpush3.bf16.msra.mxu0 %v1994_v51 }
 0x2da   : > { %1820 = vmatprep.subr.bf16.mxu0 %v2162_v0 }
 0x2dd   : > { %1821 = vmatpush3.bf16.msra.mxu0 %v1995_v52 }
 0x2de   : > { %1822 = vmatprep.subr.bf16.mxu0 %v2162_v0 }
 0x2e1   : > { %1823 = vmatpush3.bf16.msra.mxu0 %v1996_v53 }
 0x2e4   : > { %1825 = vmatmul.mubr.bf16.vlgmr.msra.gmra.mrb[4].mxu0 %v1233_v56 }
 0x3b7   : > { %v1332_v58 = vpop.f32.mrb[4].mxu0 }
 0x3b8   : > { %v1348_v60 = vmul.f32 %v1558_v57, %v1332_v58  ;;  %v1826_v61 = vpop.f32.mrb[5].mxu0 }
 0x3b9   : > { %v1335_v62 = vpop.f32.mrb[6].mxu0 }
 0x3ba   : > { %v1357_v0 = vadd.f32 %v1559_v59, %v1348_v60  ;;  %v1349_v63 = vmul.f32 %v1558_v57, %v1335_v62  ;;  %v1827_v1 = vpop.f32.mrb[7].mxu0 }
 0x3bc   : > { %v1359_v2 = vadd.f32 %v1357_v0, %v2405_v5  ;;  %v1358_v3 = vadd.f32 %v1559_v59, %v1349_v63 }
 0x3be   : > { %v1361_v4 = vmax.f32 %v1359_v2, 0.0  ;;  %v1360_v7 = vadd.f32 %v1358_v3, %v2407_v6 }
 0x3c0   : > { %1363 = vst [vmem:[%s325_s12] sm:$0xff] %v1361_v4  ;;  %v1362_v8 = vmax.f32 %v1360_v7, 0.0 }
 0x3c2   : > { %1364 = vst [vmem:[%s325_s12 + $0x8] sm:$0xff] %v1362_v8 }
 0x3c3   : > { %2096 = shalt.err (!%p2093_p2)
}
 0x3c4   : > { %s2097_s10 = scalar_lea.hbm %s2517_s9, 256  ;;  %s2101_s12 = scalar_lea.hbm %s2568_s7, 512 }
 0x3c5   : > { %p2098_p13 = scmp.ne.s32.totalorder %s2517_s9, %s2097_s10  ;;  %p2102_p4 = scmp.lt.u32.totalorder %s2517_s9, %s2568_s7 }
 0x3c6   : > { %p2103_p5 = scmp.lt.u32.totalorder %s2101_s12, %s2097_s10  ;;  %p2105_p11 = scmp.lt.u32.totalorder %s2097_s10, %s2517_s9 }
 0x3c7   : > { %p2099_p6 = pnand %p2098_p13, %p2582_p0 }
 0x3c8   : > { %p2104_p8 = por %p2103_p5, %p2102_p4 }
 0x3c9   : > { %p2100_p10 = pneg %p2099_p6 }
 0x3ca   : > { %p2106_p1 = por %p2105_p11, %p2104_p8 }
 0x3cc   : > { %p2107_p3 = pnand %p2106_p1, %p2100_p10 }
 0x3ce   : > { %2110 = shalt.err (!%p2107_p3)
}
 0x3cf   : > { %s2165_s30 = smov 128   ;;  %s2166_s20 = smov 8  }
 0x3d0   : > { %1860 = dma.vmem_to_hbm [thread:$0]  (%p2582_p0), %s2511_s14, 256, %s2517_s9, %s1366_s29, %s2165_s30, %s2165_s30, %s2166_s20  }
 0x3d1 PF: > { %s1394_s28 = sand.u32 1, %s2141_s24   ;;  %p2583_p7 = scmp.ne.s32.totalorder %s2573_s8, 0 }
 0x3d2   : > { %p2584_p9 = scmp.ge.s32.totalorder %s2153_s27, 2  ;;  %s1395_s11 = scalar_lea.sflag [#allocation6], %s1394_s28 }
 0x3d4   : > { %p1874_p12 = pnand %p2584_p9, %p2583_p7 }
 0x3d6   : > { %2136 = dma.done.wait (!%p1874_p12), %s1395_s11, 256  }
 0x3d7   : > { %2138 = vsyncadd (!%p1874_p12), %s1395_s11, 4294967040  ;;  %p21_p2 = scmp.ge.s32.totalorder %s2317_s13, 4   ;;  %s2585_s24 = smov %s2145_s25 }
 0x3d8   : > { %s2586_s25 = smov %s2149_s26  ;;  %s2587_s26 = smov %s2333_s17 }
 0x3d9   : > { %s2588_s27 = smov %s2317_s13  ;;  %23 = sbr.rel (!%p21_p2) target bundleno = 6 (0x6), region = 105 }
 0x3e0   :  { %1400 = vsyncpa [#allocation5], 1 }
 0x3e1   :  { %1402 = vsyncpa [#allocation5 + $0x1], 1 }
 0x3e2   :  { %1403 = vsyncpa [#allocation8], 1 }
 0x3e3   :  { %1404 = vsyncpa [#allocation6], 1 }
 0x3e4   :  { %1406 = vsyncpa [#allocation6 + $0x1], 1 }

</bundles_post_ra>
